<compile_context>
chip_gen: v5e
topology: v5e:2x2
jax: 0.10.0
libtpu: 0.0.40
codegen_flags: <defaults>
</compile_context>

<pallas_src>
import jax
import jax.numpy as jnp
from jax import lax
from jax.experimental import pallas as pl
from jax.experimental.pallas import tpu as pltpu


def _make_resblock_kernel(C, H, W):
    P = H * W
    PADL = W + 1  # one full padded row's worth of zeros on each side

    def conv3x3(x_cp, wmat, mask_l, mask_r):
        # x_cp: (C, P) f32, wmat: (C, 9*C) f32  ->  (C, P) f32
        zpad = jnp.zeros((C, PADL), jnp.float32)
        xpad = jnp.concatenate([zpad, x_cp, zpad], axis=1)  # (C, P + 2*(W+1))
        blocks = []
        for ky in range(3):
            for kx in range(3):
                s = (ky - 1) * W + (kx - 1)
                blk = xpad[:, PADL + s: PADL + s + P]        # (C, P) lane shift
                if kx == 0:      # left tap: invalid at w == 0 (row wrap)
                    blk = jnp.where(mask_l, blk, 0.0)
                elif kx == 2:    # right tap: invalid at w == W-1 (row wrap)
                    blk = jnp.where(mask_r, blk, 0.0)
                blocks.append(blk)
        patches = jnp.concatenate(blocks, axis=0)            # (9*C, P)
        return jnp.dot(wmat, patches, preferred_element_type=jnp.float32)

    def kernel(x_ref, w1_ref, w2_ref, s1_ref, b1_ref, s2_ref, b2_ref, out_ref):
        # x_ref: (1, C, P); weights: (C, 9*C); scale/bias: (C, 1)
        col = lax.broadcasted_iota(jnp.int32, (C, P), 1) % W
        mask_l = col >= 1
        mask_r = col <= W - 2

        x = x_ref[0].astype(jnp.float32)                      # (C, P)
        w1 = w1_ref[...].astype(jnp.float32)
        w2 = w2_ref[...].astype(jnp.float32)

        # stage 1: conv3x3 + folded-BN affine + ReLU (stays in VMEM/registers)
        h = conv3x3(x, w1, mask_l, mask_r)
        h = h * s1_ref[...] + b1_ref[...]
        h = jnp.maximum(h, 0.0)

        # stage 2: conv3x3 + folded-BN affine + residual + ReLU
        o = conv3x3(h, w2, mask_l, mask_r)
        o = o * s2_ref[...] + b2_ref[...]
        o = o + x
        o = jnp.maximum(o, 0.0)

        out_ref[0] = o.astype(out_ref.dtype)

    return kernel


def resblock_forward(x_nchw, params):
    """ResBlock forward.  Input/output in PyTorch NCHW convention.

    params: w1, w2 in PyTorch OIHW (C, C, 3, 3); scale/bias = folded eval-mode
    BatchNorm affine, shape (C,).
    """
    B, C, H, W = x_nchw.shape
    P = H * W

    # Free reshape: channels -> sublanes, flattened spatial -> lanes.
    x_flat = x_nchw.reshape(B, C, P)

    # (co, ci, ky, kx) -> (co, ky, kx, ci) -> (C, 9*C); column index
    # (ky*3+kx)*C + ci matches the in-kernel patch row ordering.
    w1m = jnp.transpose(params["w1"], (0, 2, 3, 1)).reshape(C, 9 * C)
    w2m = jnp.transpose(params["w2"], (0, 2, 3, 1)).reshape(C, 9 * C)

    s1 = params["scale1"].reshape(C, 1).astype(jnp.float32)
    b1 = params["bias1"].reshape(C, 1).astype(jnp.float32)
    s2 = params["scale2"].reshape(C, 1).astype(jnp.float32)
    b2 = params["bias2"].reshape(C, 1).astype(jnp.float32)

    kernel = _make_resblock_kernel(C, H, W)

    out_flat = pl.pallas_call(
        kernel,
        out_shape=jax.ShapeDtypeStruct((B, C, P), x_nchw.dtype),
        grid_spec=pltpu.PrefetchScalarGridSpec(
            num_scalar_prefetch=0,
            grid=(B,),
            in_specs=[
                pl.BlockSpec((1, C, P), lambda b: (b, 0, 0)),      # x
                pl.BlockSpec((C, 9 * C), lambda b: (0, 0)),        # w1
                pl.BlockSpec((C, 9 * C), lambda b: (0, 0)),        # w2
                pl.BlockSpec((C, 1), lambda b: (0, 0)),            # scale1
                pl.BlockSpec((C, 1), lambda b: (0, 0)),            # bias1
                pl.BlockSpec((C, 1), lambda b: (0, 0)),            # scale2
                pl.BlockSpec((C, 1), lambda b: (0, 0)),            # bias2
            ],
            out_specs=pl.BlockSpec((1, C, P), lambda b: (b, 0, 0)),
        ),
        compiler_params=pltpu.CompilerParams(
            dimension_semantics=("parallel",)),
    )(x_flat, w1m, w2m, s1, b1, s2, b2)

    return out_flat.reshape(B, C, H, W)


def _fold_bn(gamma, beta, mean, var, eps=1e-5):
    scale = gamma / jnp.sqrt(var + eps)
    bias = beta - mean * scale
    return scale, bias


def _reference_nchw(x, params):
    """Plain-JAX NCHW reference (same semantics) for verification."""
    def conv(a, w):
        return lax.conv_general_dilated(
            a, w, (1, 1), "SAME",
            dimension_numbers=("NCHW", "OIHW", "NCHW"))
    s1 = params["scale1"].reshape(1, -1, 1, 1)
    b1 = params["bias1"].reshape(1, -1, 1, 1)
    s2 = params["scale2"].reshape(1, -1, 1, 1)
    b2 = params["bias2"].reshape(1, -1, 1, 1)
    h = jnp.maximum(conv(x, params["w1"]) * s1 + b1, 0.0)
    o = conv(h, params["w2"]) * s2 + b2 + x
    return jnp.maximum(o, 0.0)


if __name__ == "__main__":
    B, C, H, W = 2, 4, 16, 16
    key = jax.random.PRNGKey(0)
    ks = jax.random.split(key, 9)

    x = jax.random.normal(ks[0], (B, C, H, W), jnp.float32)

    # Conv weights in PyTorch layout (Cout, Cin, 3, 3), no bias.
    w1 = jax.random.normal(ks[1], (C, C, 3, 3), jnp.float32) * 0.2
    w2 = jax.random.normal(ks[2], (C, C, 3, 3), jnp.float32) * 0.2

    # BatchNorm parameters / running stats (deterministic, eval mode).
    g1 = 1.0 + 0.1 * jax.random.normal(ks[3], (C,), jnp.float32)
    b1 = 0.1 * jax.random.normal(ks[4], (C,), jnp.float32)
    m1 = 0.1 * jax.random.normal(ks[5], (C,), jnp.float32)
    v1 = jnp.abs(jax.random.normal(ks[6], (C,), jnp.float32)) + 0.5
    g2 = 1.0 + 0.1 * jax.random.normal(ks[7], (C,), jnp.float32)
    b2 = 0.1 * jax.random.normal(ks[8], (C,), jnp.float32)
    m2 = jnp.zeros((C,), jnp.float32)
    v2 = jnp.ones((C,), jnp.float32)

    s1, o1 = _fold_bn(g1, b1, m1, v1)
    s2, o2 = _fold_bn(g2, b2, m2, v2)

    params = dict(w1=w1, w2=w2, scale1=s1, bias1=o1, scale2=s2, bias2=o2)

    out = jax.block_until_ready(resblock_forward(x, params))

    ref = _reference_nchw(x, params)
    assert out.shape == (B, C, H, W)
    assert jnp.allclose(out, ref, atol=1e-4, rtol=1e-4), "mismatch vs reference"

    print("KERNEL_OK")
</pallas_src>

<mosaic_0001>
module attributes {stable_mosaic.version = 11 : i64} {
  func.func @kernel(%arg0: i32, %arg1: memref<1x4x256xf32, #tpu.memory_space<vmem>>, %arg2: memref<4x36xf32, #tpu.memory_space<vmem>>, %arg3: memref<4x36xf32, #tpu.memory_space<vmem>>, %arg4: memref<4x1xf32, #tpu.memory_space<vmem>>, %arg5: memref<4x1xf32, #tpu.memory_space<vmem>>, %arg6: memref<4x1xf32, #tpu.memory_space<vmem>>, %arg7: memref<4x1xf32, #tpu.memory_space<vmem>>, %arg8: memref<1x4x256xf32, #tpu.memory_space<vmem>>) attributes {dimension_semantics = [#tpu.dimension_semantics<parallel>], iteration_bounds = array<i64: 2>, scalar_prefetch = 0 : i64, scratch_operands = 0 : i64, tpu.core_type = #tpu.core_type<tc>, window_params = [{transform_indices = @transform_0, window_bounds = array<i64: 1, 4, 256>}, {pipeline_mode = #tpu.pipeline_mode<synchronous>, transform_indices = @transform_1, window_bounds = array<i64: 4, 36>}, {pipeline_mode = #tpu.pipeline_mode<synchronous>, transform_indices = @transform_2, window_bounds = array<i64: 4, 36>}, {pipeline_mode = #tpu.pipeline_mode<synchronous>, transform_indices = @transform_3, window_bounds = array<i64: 4, 1>}, {pipeline_mode = #tpu.pipeline_mode<synchronous>, transform_indices = @transform_4, window_bounds = array<i64: 4, 1>}, {pipeline_mode = #tpu.pipeline_mode<synchronous>, transform_indices = @transform_5, window_bounds = array<i64: 4, 1>}, {pipeline_mode = #tpu.pipeline_mode<synchronous>, transform_indices = @transform_6, window_bounds = array<i64: 4, 1>}, {transform_indices = @transform_7, window_bounds = array<i64: 1, 4, 256>}]} {
    %0 = tpu.iota {dimensions = array<i32: 1>} : vector<4x256xi32>
    %c16_i32 = arith.constant 16 : i32
    %c0_i32 = arith.constant 0 : i32
    %1 = arith.cmpi eq, %c16_i32, %c0_i32 : i32
    %c1_i32 = arith.constant 1 : i32
    %2 = arith.select %1, %c1_i32, %c16_i32 : i32
    %3 = vector.broadcast %2 : i32 to vector<4x256xi32>
    %4 = arith.remsi %0, %3 : vector<4x256xi32>
    %c0_i32_0 = arith.constant 0 : i32
    %5 = vector.broadcast %c0_i32_0 : i32 to vector<4x256xi32>
    %6 = arith.cmpi ne, %4, %5 : vector<4x256xi32>
    %c0_i32_1 = arith.constant 0 : i32
    %7 = vector.broadcast %c0_i32_1 : i32 to vector<4x256xi32>
    %8 = arith.cmpi slt, %4, %7 : vector<4x256xi32>
    %c0_i32_2 = arith.constant 0 : i32
    %9 = arith.cmpi slt, %2, %c0_i32_2 : i32
    %10 = vector.broadcast %9 : i1 to vector<4x256xi1>
    %11 = vector.broadcast %10 : vector<4x256xi1> to vector<4x256xi1>
    %12 = arith.xori %8, %11 : vector<4x256xi1>
    %13 = arith.andi %12, %6 : vector<4x256xi1>
    %14 = vector.broadcast %2 : i32 to vector<4x256xi32>
    %15 = arith.addi %4, %14 : vector<4x256xi32>
    %16 = arith.select %13, %15, %4 : vector<4x256xi1>, vector<4x256xi32>
    %c1_i32_3 = arith.constant 1 : i32
    %17 = vector.broadcast %c1_i32_3 : i32 to vector<4x256xi32>
    %18 = arith.cmpi sge, %16, %17 : vector<4x256xi32>
    %c14_i32 = arith.constant 14 : i32
    %19 = vector.broadcast %c14_i32 : i32 to vector<4x256xi32>
    %20 = arith.cmpi sle, %16, %19 : vector<4x256xi32>
    %c0 = arith.constant 0 : index
    %c0_4 = arith.constant 0 : index
    %c0_5 = arith.constant 0 : index
    %21 = vector.load %arg1[%c0, %c0_4, %c0_5] : memref<1x4x256xf32, #tpu.memory_space<vmem>>, vector<1x4x256xf32>
    %22 = vector.shape_cast %21 : vector<1x4x256xf32> to vector<4x256xf32>
    %c0_6 = arith.constant 0 : index
    %c0_7 = arith.constant 0 : index
    %23 = vector.load %arg2[%c0_6, %c0_7] : memref<4x36xf32, #tpu.memory_space<vmem>>, vector<4x36xf32>
    %c0_8 = arith.constant 0 : index
    %c0_9 = arith.constant 0 : index
    %24 = vector.load %arg3[%c0_8, %c0_9] : memref<4x36xf32, #tpu.memory_space<vmem>>, vector<4x36xf32>
    %cst = arith.constant 0.000000e+00 : f32
    %25 = vector.broadcast %cst : f32 to vector<4x17xf32>
    %26 = tpu.concatenate %25, %22, %25 in 1 : vector<4x17xf32>, vector<4x256xf32>, vector<4x17xf32> -> vector<4x290xf32>
    %27 = vector.extract_strided_slice %26 {offsets = [0, 0], sizes = [4, 256], strides = [1, 1]} : vector<4x290xf32> to vector<4x256xf32>
    %cst_10 = arith.constant 0.000000e+00 : f32
    %28 = vector.broadcast %cst_10 : f32 to vector<4x256xf32>
    %29 = arith.select %18, %27, %28 : vector<4x256xi1>, vector<4x256xf32>
    %30 = vector.extract_strided_slice %26 {offsets = [0, 1], sizes = [4, 256], strides = [1, 1]} : vector<4x290xf32> to vector<4x256xf32>
    %31 = vector.extract_strided_slice %26 {offsets = [0, 2], sizes = [4, 256], strides = [1, 1]} : vector<4x290xf32> to vector<4x256xf32>
    %cst_11 = arith.constant 0.000000e+00 : f32
    %32 = vector.broadcast %cst_11 : f32 to vector<4x256xf32>
    %33 = arith.select %20, %31, %32 : vector<4x256xi1>, vector<4x256xf32>
    %34 = vector.extract_strided_slice %26 {offsets = [0, 16], sizes = [4, 256], strides = [1, 1]} : vector<4x290xf32> to vector<4x256xf32>
    %cst_12 = arith.constant 0.000000e+00 : f32
    %35 = vector.broadcast %cst_12 : f32 to vector<4x256xf32>
    %36 = arith.select %18, %34, %35 : vector<4x256xi1>, vector<4x256xf32>
    %37 = vector.extract_strided_slice %26 {offsets = [0, 17], sizes = [4, 256], strides = [1, 1]} : vector<4x290xf32> to vector<4x256xf32>
    %38 = vector.extract_strided_slice %26 {offsets = [0, 18], sizes = [4, 256], strides = [1, 1]} : vector<4x290xf32> to vector<4x256xf32>
    %cst_13 = arith.constant 0.000000e+00 : f32
    %39 = vector.broadcast %cst_13 : f32 to vector<4x256xf32>
    %40 = arith.select %20, %38, %39 : vector<4x256xi1>, vector<4x256xf32>
    %41 = vector.extract_strided_slice %26 {offsets = [0, 32], sizes = [4, 256], strides = [1, 1]} : vector<4x290xf32> to vector<4x256xf32>
    %cst_14 = arith.constant 0.000000e+00 : f32
    %42 = vector.broadcast %cst_14 : f32 to vector<4x256xf32>
    %43 = arith.select %18, %41, %42 : vector<4x256xi1>, vector<4x256xf32>
    %44 = vector.extract_strided_slice %26 {offsets = [0, 33], sizes = [4, 256], strides = [1, 1]} : vector<4x290xf32> to vector<4x256xf32>
    %45 = vector.extract_strided_slice %26 {offsets = [0, 34], sizes = [4, 256], strides = [1, 1]} : vector<4x290xf32> to vector<4x256xf32>
    %cst_15 = arith.constant 0.000000e+00 : f32
    %46 = vector.broadcast %cst_15 : f32 to vector<4x256xf32>
    %47 = arith.select %20, %45, %46 : vector<4x256xi1>, vector<4x256xf32>
    %48 = tpu.concatenate %29, %30, %33, %36, %37, %40, %43, %44, %47 in 0 : vector<4x256xf32>, vector<4x256xf32>, vector<4x256xf32>, vector<4x256xf32>, vector<4x256xf32>, vector<4x256xf32>, vector<4x256xf32>, vector<4x256xf32>, vector<4x256xf32> -> vector<36x256xf32>
    %cst_16 = arith.constant dense<0.000000e+00> : vector<4x256xf32>
    %49 = tpu.matmul %23, %48, %cst_16 {dimension_numbers = #tpu.dot_dimension_numbers<[1], [0], [0], [1], [0, 0, 1, 1], [], []>} : vector<4x36xf32>, vector<36x256xf32>, vector<4x256xf32> -> vector<4x256xf32>
    %c0_17 = arith.constant 0 : index
    %c0_18 = arith.constant 0 : index
    %50 = vector.load %arg4[%c0_17, %c0_18] : memref<4x1xf32, #tpu.memory_space<vmem>>, vector<4x1xf32>
    %51 = vector.broadcast %50 : vector<4x1xf32> to vector<4x256xf32>
    %52 = arith.mulf %49, %51 : vector<4x256xf32>
    %c0_19 = arith.constant 0 : index
    %c0_20 = arith.constant 0 : index
    %53 = vector.load %arg5[%c0_19, %c0_20] : memref<4x1xf32, #tpu.memory_space<vmem>>, vector<4x1xf32>
    %54 = vector.broadcast %53 : vector<4x1xf32> to vector<4x256xf32>
    %55 = arith.addf %52, %54 : vector<4x256xf32>
    %cst_21 = arith.constant 0.000000e+00 : f32
    %56 = vector.broadcast %cst_21 : f32 to vector<4x256xf32>
    %57 = arith.maximumf %55, %56 : vector<4x256xf32>
    %cst_22 = arith.constant 0.000000e+00 : f32
    %58 = vector.broadcast %cst_22 : f32 to vector<4x17xf32>
    %59 = tpu.concatenate %58, %57, %58 in 1 : vector<4x17xf32>, vector<4x256xf32>, vector<4x17xf32> -> vector<4x290xf32>
    %60 = vector.extract_strided_slice %59 {offsets = [0, 0], sizes = [4, 256], strides = [1, 1]} : vector<4x290xf32> to vector<4x256xf32>
    %cst_23 = arith.constant 0.000000e+00 : f32
    %61 = vector.broadcast %cst_23 : f32 to vector<4x256xf32>
    %62 = arith.select %18, %60, %61 : vector<4x256xi1>, vector<4x256xf32>
    %63 = vector.extract_strided_slice %59 {offsets = [0, 1], sizes = [4, 256], strides = [1, 1]} : vector<4x290xf32> to vector<4x256xf32>
    %64 = vector.extract_strided_slice %59 {offsets = [0, 2], sizes = [4, 256], strides = [1, 1]} : vector<4x290xf32> to vector<4x256xf32>
    %cst_24 = arith.constant 0.000000e+00 : f32
    %65 = vector.broadcast %cst_24 : f32 to vector<4x256xf32>
    %66 = arith.select %20, %64, %65 : vector<4x256xi1>, vector<4x256xf32>
    %67 = vector.extract_strided_slice %59 {offsets = [0, 16], sizes = [4, 256], strides = [1, 1]} : vector<4x290xf32> to vector<4x256xf32>
    %cst_25 = arith.constant 0.000000e+00 : f32
    %68 = vector.broadcast %cst_25 : f32 to vector<4x256xf32>
    %69 = arith.select %18, %67, %68 : vector<4x256xi1>, vector<4x256xf32>
    %70 = vector.extract_strided_slice %59 {offsets = [0, 17], sizes = [4, 256], strides = [1, 1]} : vector<4x290xf32> to vector<4x256xf32>
    %71 = vector.extract_strided_slice %59 {offsets = [0, 18], sizes = [4, 256], strides = [1, 1]} : vector<4x290xf32> to vector<4x256xf32>
    %cst_26 = arith.constant 0.000000e+00 : f32
    %72 = vector.broadcast %cst_26 : f32 to vector<4x256xf32>
    %73 = arith.select %20, %71, %72 : vector<4x256xi1>, vector<4x256xf32>
    %74 = vector.extract_strided_slice %59 {offsets = [0, 32], sizes = [4, 256], strides = [1, 1]} : vector<4x290xf32> to vector<4x256xf32>
    %cst_27 = arith.constant 0.000000e+00 : f32
    %75 = vector.broadcast %cst_27 : f32 to vector<4x256xf32>
    %76 = arith.select %18, %74, %75 : vector<4x256xi1>, vector<4x256xf32>
    %77 = vector.extract_strided_slice %59 {offsets = [0, 33], sizes = [4, 256], strides = [1, 1]} : vector<4x290xf32> to vector<4x256xf32>
    %78 = vector.extract_strided_slice %59 {offsets = [0, 34], sizes = [4, 256], strides = [1, 1]} : vector<4x290xf32> to vector<4x256xf32>
    %cst_28 = arith.constant 0.000000e+00 : f32
    %79 = vector.broadcast %cst_28 : f32 to vector<4x256xf32>
    %80 = arith.select %20, %78, %79 : vector<4x256xi1>, vector<4x256xf32>
    %81 = tpu.concatenate %62, %63, %66, %69, %70, %73, %76, %77, %80 in 0 : vector<4x256xf32>, vector<4x256xf32>, vector<4x256xf32>, vector<4x256xf32>, vector<4x256xf32>, vector<4x256xf32>, vector<4x256xf32>, vector<4x256xf32>, vector<4x256xf32> -> vector<36x256xf32>
    %cst_29 = arith.constant dense<0.000000e+00> : vector<4x256xf32>
    %82 = tpu.matmul %24, %81, %cst_29 {dimension_numbers = #tpu.dot_dimension_numbers<[1], [0], [0], [1], [0, 0, 1, 1], [], []>} : vector<4x36xf32>, vector<36x256xf32>, vector<4x256xf32> -> vector<4x256xf32>
    %c0_30 = arith.constant 0 : index
    %c0_31 = arith.constant 0 : index
    %83 = vector.load %arg6[%c0_30, %c0_31] : memref<4x1xf32, #tpu.memory_space<vmem>>, vector<4x1xf32>
    %84 = vector.broadcast %83 : vector<4x1xf32> to vector<4x256xf32>
    %85 = arith.mulf %82, %84 : vector<4x256xf32>
    %c0_32 = arith.constant 0 : index
    %c0_33 = arith.constant 0 : index
    %86 = vector.load %arg7[%c0_32, %c0_33] : memref<4x1xf32, #tpu.memory_space<vmem>>, vector<4x1xf32>
    %87 = vector.broadcast %86 : vector<4x1xf32> to vector<4x256xf32>
    %88 = arith.addf %85, %87 : vector<4x256xf32>
    %89 = arith.addf %88, %22 : vector<4x256xf32>
    %cst_34 = arith.constant 0.000000e+00 : f32
    %90 = vector.broadcast %cst_34 : f32 to vector<4x256xf32>
    %91 = arith.maximumf %89, %90 : vector<4x256xf32>
    %c0_35 = arith.constant 0 : index
    %c0_36 = arith.constant 0 : index
    %c0_37 = arith.constant 0 : index
    %92 = vector.load %arg8[%c0_35, %c0_36, %c0_37] : memref<1x4x256xf32, #tpu.memory_space<vmem>>, vector<1x4x256xf32>
    %93 = vector.shape_cast %92 : vector<1x4x256xf32> to vector<4x256xf32>
    %94 = vector.shape_cast %91 : vector<4x256xf32> to vector<1x4x256xf32>
    tpu.vector_store %arg8[%c0_35, %c0_36, %c0_37], %94 {strides = array<i32>} : memref<1x4x256xf32, #tpu.memory_space<vmem>>, vector<1x4x256xf32>,
    return
  }
  func.func @transform_0(%arg0: i32) -> (i32, i32, i32) {
    %c0_i32 = arith.constant 0 : i32
    %c0_i32_0 = arith.constant 0 : i32
    %c0_i32_1 = arith.constant 0 : i32
    return %arg0, %c0_i32, %c0_i32_0 : i32, i32, i32
  }
  func.func @transform_1(%arg0: i32) -> (i32, i32) {
    %c0_i32 = arith.constant 0 : i32
    %c0_i32_0 = arith.constant 0 : i32
    %c0_i32_1 = arith.constant 0 : i32
    return %c0_i32, %c0_i32_0 : i32, i32
  }
  func.func @transform_2(%arg0: i32) -> (i32, i32) {
    %c0_i32 = arith.constant 0 : i32
    %c0_i32_0 = arith.constant 0 : i32
    %c0_i32_1 = arith.constant 0 : i32
    return %c0_i32, %c0_i32_0 : i32, i32
  }
  func.func @transform_3(%arg0: i32) -> (i32, i32) {
    %c0_i32 = arith.constant 0 : i32
    %c0_i32_0 = arith.constant 0 : i32
    %c0_i32_1 = arith.constant 0 : i32
    return %c0_i32, %c0_i32_0 : i32, i32
  }
  func.func @transform_4(%arg0: i32) -> (i32, i32) {
    %c0_i32 = arith.constant 0 : i32
    %c0_i32_0 = arith.constant 0 : i32
    %c0_i32_1 = arith.constant 0 : i32
    return %c0_i32, %c0_i32_0 : i32, i32
  }
  func.func @transform_5(%arg0: i32) -> (i32, i32) {
    %c0_i32 = arith.constant 0 : i32
    %c0_i32_0 = arith.constant 0 : i32
    %c0_i32_1 = arith.constant 0 : i32
    return %c0_i32, %c0_i32_0 : i32, i32
  }
  func.func @transform_6(%arg0: i32) -> (i32, i32) {
    %c0_i32 = arith.constant 0 : i32
    %c0_i32_0 = arith.constant 0 : i32
    %c0_i32_1 = arith.constant 0 : i32
    return %c0_i32, %c0_i32_0 : i32, i32
  }
  func.func @transform_7(%arg0: i32) -> (i32, i32, i32) {
    %c0_i32 = arith.constant 0 : i32
    %c0_i32_0 = arith.constant 0 : i32
    %c0_i32_1 = arith.constant 0 : i32
    return %arg0, %c0_i32, %c0_i32_0 : i32, i32, i32
  }
}

</mosaic_0001>

<bundles_post_ra>
// kernel: tpu_custom_call.1
= control target key start
LH: loop header
LB: loop body
LE: loop exit
PB: predicated region body
PF: predicated region fallthrough
CT: control target
= control target key end

     0   :  { %12 = vsyncpa [#allocation3], 0  ;;  %s1487_s0 = inlined_call_operand.hbm [shape: f32[2,4,256], index: 0, kind: input, shape index: {}]   ;;  %s1488_s1 = inlined_call_operand.vmem [shape: f32[4,36], index: 1, kind: input, shape index: {}]   ;;  %s1489_s2 = inlined_call_operand.vmem [shape: f32[4,36], index: 2, kind: input, shape index: {}]   ;;  %s1490_s3 = inlined_call_operand.vmem [shape: f32[4,1], index: 3, kind: input, shape index: {}]   ;;  %s1491_s4 = inlined_call_operand.vmem [shape: f32[4,1], index: 4, kind: input, shape index: {}]   ;;  %s1492_s5 = inlined_call_operand.vmem [shape: f32[4,1], index: 5, kind: input, shape index: {}]   ;;  %s1493_s6 = inlined_call_operand.vmem [shape: f32[4,1], index: 6, kind: input, shape index: {}]   ;;  %s1494_s7 = inlined_call_operand.hbm [shape: f32[2,4,256], index: 7, kind: output, shape index: {}]  }
   0x1   :  { %14 = vsyncpa [#allocation3 + $0x1], 0 }
   0x2   :  { %15 = vsyncpa [#allocation4], 0 }
   0x3   :  { %17 = vsyncpa [#allocation4 + $0x1], 0  ;;  %s1137_s24 = smov 0   ;;  %s1139_s25 = smov 0  }
   0x4   :  { %s1141_s26 = smov 0   ;;  %s1143_s27 = smov 0  }
   0x5 LB: > { %s1158_s28 = sadd.s32 4294967295, %s1085_s27   ;;  %s836_s29 = sadd.s32 4294967294, %s1085_s27   ;;  %s1085_s27 = sphi %s1143_s27, %s1514_s27   ;;  %s1081_s26 = sphi %s1141_s26, %s1513_s26   ;;  %s1077_s25 = sphi %s1139_s25, %s1512_s25   ;;  %s1073_s24 = sphi %s1137_s24, %s1511_s24  }
   0x6   : > { %s1162_s30 = sadd.s32 1, %s1085_s27   ;;  %s30_s8 = sadd.s32 1, %s1081_s26 }
   0x7   : > { %s27_s9 = ssub.s32 %s1085_s27, %s1162_s30  ;;  %p37_p0 = scmp.ne.s32.totalorder %s1081_s26, %s1077_s25 }
   0x8   : > { %p28_p1 = scmp.eq.s32.totalorder %s27_s9, 0  ;;  %p38_p2 = scmp.eq.s32.totalorder %s1085_s27, 0 }
   0x9   : > { %p43_p3 = scmp.ne.s32.totalorder %s1077_s25, %s1073_s24  ;;  %p44_p4 = scmp.eq.s32.totalorder %s1158_s28, 0 }
   0xa   : > { %s1174_s10 = scalar_select %p28_p1, %s1081_s26, %s30_s8  }
   0xb   : > { %p1176_p5 = por %p38_p2, %p37_p0  ;;  %p1180_p6 = por %p44_p4, %p43_p3 }
   0xc   : > { %1495 = sst [smem:[#allocation8_spill]] %s1174_s10  ;;  %p193_p7 = scmp.eq.s32.totalorder %s1158_s28, 1 }
   0xd   : > { %p199_p8 = scmp.eq.s32.totalorder %s836_s29, 1  ;;  %p872_p10 = scmp.lt.s32.totalorder %s1085_s27, 2 }
   0xe   : > { %p1187_p11 = por %p193_p7, %p37_p0  ;;  %s237_s15 = sand.u32 1, %s1081_s26  }
   0xf   : > { %p1191_p12 = por %p199_p8, %p43_p3  ;;  %s858_s16 = sshll.u32 %s1085_s27, 3 }
  0x10   : > { %s839_s17 = sshll.u32 %s237_s15, 3  ;;  %s246_s20 = scalar_lea.hbm %s1487_s0, %s858_s16 }
  0x11   : > { %s248_s21 = sshll.u32 %s246_s20, 4  ;;  %s241_s22 = scalar_lea.vmem [#allocation2], %s839_s17  ;;  %s249_s21 = int_to_ptr.hbm [resolvable:$true] %s248_s21 }
  0x12   : > { %s250_s23 = sshll.u32 %s241_s22, 4  ;;  %p1202_p13 = pnand %p872_p10, %p1176_p5  ;;  %s251_s23 = int_to_ptr.vmem [resolvable:$true] %s250_s23 }
  0x13   : > { %p842_p0 = scmp.ge.s32.totalorder %s1085_s27, 1  ;;  %p255_p1 = scmp.lt.s32.totalorder %s1085_s27, 3 }
  0x14   : > { %s238_s8 = scalar_lea.sflag [#allocation3], %s237_s15  ;;  %s989_s9 = sshra.s32 %s249_s21, 4  ;;  %s990_s9 = int_to_ptr.hbm [resolvable:$true] %s989_s9 }
  0x15   : > { %s991_s10 = scalar_lea.hbm %s990_s9, 8  ;;  %p993_p3 = pneg %p1202_p13 }
  0x16   : > { %p992_p2 = scmp.ne.s32.totalorder %s990_s9, %s991_s10  ;;  %s996_s11 = scalar_lea.hbm %s1487_s0, 16 }
  0x17   : > { %p997_p5 = scmp.lt.s32.totalorder %s990_s9, %s1487_s0  ;;  %p998_p8 = scmp.lt.s32.totalorder %s996_s11, %s991_s10 }
  0x18   : > { %p994_p4 = pnand %p993_p3, %p992_p2 }
  0x19   : > { %p999_p10 = por %p998_p8, %p997_p5 }
  0x1a   : > { %p995_p7 = pneg %p994_p4 }
  0x1c   : > { %p1000_p9 = pnand %p999_p10, %p995_p7 }
  0x1e   : > { %1003 = shalt.err (!%p1000_p9)
}
  0x1f   : > { %867 = dma.hbm_to_vmem [thread:$0]  (!%p1202_p13), %s249_s21, 128, %s251_s23, %s238_s8  }
  0x20   : > { %p256_p2 = pnand %p842_p0, %p255_p1 }
  0x21   : > { %s1223_s15 = sand.u32 (!%p256_p2), 1, %s1077_s25  }
  0x22   : > { %259 = sbr.rel (%p256_p2) target bundleno = 877 (0x36d), region = 48  ;;  %s843_s10 = sshll.u32 (!%p256_p2), %s1223_s15, 3 }
  0x23   : > { %s262_s20 = scalar_lea.sflag (!%p256_p2), [#allocation3], %s1223_s15  ;;  %s265_s22 = scalar_lea.vmem (!%p256_p2), [#allocation2], %s843_s10 }
  0x27   : > { %1064 = dma.done.wait (%p1180_p6), %s262_s20, 128  }
  0x28   : > { %1066 = vsyncadd (%p1180_p6), %s262_s20, 4294967168  ;;  %v328_v0 = vld [vmem:[%s265_s22] sm:$0xff]  ;;  %s1087_s21 = smov 17   ;;  %vm339_vm0 = vcmask 138240   ;;  %s1088_s23 = smov 94   ;;  %v297_v15 = vlaneseq  ;;  %vm408_vm1 = vcmask 769024  }
  0x29   : > { %332 = vst [vmem:[#allocation1] ss:$2 sm:$0xff] %v328_v0  ;;  %s1089_s12 = smov 110   ;;  %s1090_s29 = smov 112   ;;  %vm463_vm3 = vcmask 1043456   ;;  %v1096_v35 = vmov 0  }
  0x2a   : > { %s1091_s8 = smov 96   ;;  %s1092_s9 = smov 126   ;;  %v298_v17 = vand.u32 127, %v297_v15  ;;  %v522_v32 = vld [vmem:[%s1490_s3] sm:$0xf]  ;;  %951 = vset.pattern.permute.xlu1 %v1096_v35  ;;  %952 = vset.pattern.permute.xlu2 %v1096_v35  ;;  %vm382_vm5 = vcmask 900096  }
  0x2b   : > { %s1093_s16 = smov 111   ;;  %s1094_s17 = smov 95   ;;  %v530_v33 = vld [vmem:[%s1491_s4] sm:$0xf]  ;;  %988 = vset.pattern.permute.xlu0 %v1096_v35  ;;  %vm369_vm6 = vcmask 916480   ;;  %vm395_vm7 = vcmask 785408  }
  0x2c   : > { %s1095_s11 = smov 127   ;;  %v299_v19 = vadd.s32 128, %v298_v17  ;;  %v304_v23 = vand.u32 15, %v298_v17  ;;  %vm441_vm10 = vcmask 908288   ;;  %vm356_vm11 = vcmask 1031168   ;;  %s296_s22 = scalar_lea.vmem [#allocation5], %s843_s10 }
  0x2d   : > { %vm458_vm12 = vcmask 777216   ;;  %vm424_vm13 = vcmask 1039360   ;;  %vm472_vm14 = vcmask 293888   ;;  %s763_s18 = sshll.u32 %s296_s22, 4  ;;  %s1039_s10 = scalar_lea.hbm %s1494_s7, 16  ;;  %s764_s18 = int_to_ptr.vmem [resolvable:$true] %s763_s18 }
  0x2e   : > { %v311_v20 = vand.u32 15, %v299_v19  ;;  %vm1269_vm4 = vcmp.le.s32.totalorder %v304_v23, 14  ;;  %vm1294_vm8 = vcmp.ge.s32.totalorder %v304_v23, 1 }
  0x30   : > { %v333_v1 = vld.sshfl [vmem:[#allocation1] sm:$0xff pattern:$0x75316420]  ;;  %v334_v2 = vld.sshfl [vmem:[#allocation1 + $0x8] sm:$0xff pattern:$0x75316420] }
  0x31   : > { %335 = vrot.lane.b32.xlu0 %v333_v1, %s1087_s21  ;;  %734 = vst [vmem:[#allocation1] ss:$2 sm:$0xff] %v328_v0  ;;  %vm1265_vm2 = vcmp.le.s32.totalorder %v311_v20, 14  ;;  %vm1299_vm9 = vcmp.ge.s32.totalorder %v311_v20, 1 }
  0x39   : > { %337 = vrot.lane.b32.xlu0 %v334_v2, %s1087_s21 }
  0xa3   : > { %v336_v3 = vpop.permute.xlu0 %335 }
  0xa4   : > { %v1236_v4 = vsel %vm339_vm0, 0.0, %v336_v3 }
  0xa5   : > { %402 = vrot.lane.b32.xlu1 %v1236_v4, %s1088_s23  ;;  %v415_v10 = vrot.slane %v1236_v4, 4 }
  0xab   : > { %v338_v5 = vpop.permute.xlu0 %337 }
  0xac   : > { %v1241_v6 = vsel %vm339_vm0, %v336_v3, %v338_v5  ;;  %v345_v7 = vsel %vm339_vm0, %v338_v5, 0.0 }
  0xad   : > { %380 = vrot.lane.b32.xlu0 %v345_v7, %s1089_s12  ;;  %406 = vrot.lane.b32.xlu2 %v345_v7, %s1088_s23  ;;  %v916_v8 = vpack.i.bf16 %v1241_v6, %v1236_v4  ;;  %v416_v9 = vrot.slane %v1241_v6, 4  ;;  %v417_v12 = vrot.slane %v345_v7, 4 }
  0xae   : > { %404 = vrot.lane.b32.xlu1 %v1241_v6, %s1088_s23 }
  0xaf   : > { %v941_v11 = vpack.i.bf16 %v416_v9, %v415_v10 }
  0xb5   : > { %367 = vrot.lane.b32.xlu0 %v345_v7, %s1090_s29  ;;  %917 = vrot.lane.b32.xlu2 %v916_v8, %s1089_s12 }
  0xb6   : > { %922 = vrot.lane.b32.xlu1 %v916_v8, %s1091_s8 }
  0xbd   : > { %937 = vrot.lane.b32.xlu0 %v916_v8, %s1092_s9  ;;  %393 = vrot.lane.b32.xlu2 %v345_v7, %s1091_s8 }
  0xbe   : > { %932 = vrot.lane.b32.xlu1 %v916_v8, %s1093_s16 }
  0xc5   : > { %927 = vrot.lane.b32.xlu2 %v916_v8, %s1090_s29  ;;  %942 = vrot.lane.b32.xlu0 %v941_v11, %s1094_s17 }
  0xc6   : > { %456 = vrot.lane.b32.xlu1 %v417_v12, %s1094_s17 }
  0xcd   : > { %439 = vrot.lane.b32.xlu2 %v345_v7, %s1093_s16  ;;  %422 = vrot.lane.b32.xlu0 %v417_v12, %s1095_s11 }
  0xce   : > { %354 = vrot.lane.b32.xlu1 %v345_v7, %s1092_s9 }
  0xd5   : > { %947 = vrot.lane.b32.xlu2 %v941_v11, %s1095_s11 }
  0xd6   : > { %525 = vperm.xlu1 %951, %v522_v32  }
  0xdd   : > { %533 = vperm.xlu2 %952, %v530_v33  }
 0x107   : > { %v407_v13 = vpop.permute.xlu2 %406 }
 0x10f   : > { %v918_v14 = vpop.permute.xlu2 %917 }
 0x110   : > { %v920_v36 = vunpack.i.h.bf16 %v918_v14  ;;  %v919_v37 = vunpack.i.l.bf16 %v918_v14 }
 0x112   : > { %v383_v41 = vsel %vm382_vm5, %v919_v37, %v920_v36 }
 0x113   : > { %v387_v49 = vsel %vm1269_vm4, %v383_v41, 0.0 }
 0x114   : > { %v448_v60 = vrot.slane %v387_v49, 4 }
 0x117   : > { %v403_v16 = vpop.permute.xlu1 %402  ;;  %v394_v18 = vpop.permute.xlu2 %393 }
 0x11f   : > { %v381_v22 = vpop.permute.xlu0 %380  ;;  %v1275_v28 = vpop.permute.xlu2 %927 }
 0x120   : > { %v405_v24 = vpop.permute.xlu1 %404  ;;  %v930_v42 = vunpack.i.h.bf16 %v1275_v28  ;;  %v929_v43 = vunpack.i.l.bf16 %v1275_v28  ;;  %v384_v47 = vsel %vm382_vm5, %v920_v36, %v381_v22  ;;  %v329_v28 = vld [vmem:[%s1488_s1] sm:$0xf] }
 0x121   : > { %v409_v26 = vsel %vm408_vm1, %v403_v16, %v405_v24  ;;  %v410_v27 = vsel %vm408_vm1, %v405_v24, %v407_v13  ;;  %v388_v58 = vsel %vm1265_vm2, %v384_v47, 0.0 }
 0x122   : > { %v413_v29 = vsel %vm1269_vm4, %v409_v26, 0.0  ;;  %v414_v30 = vsel %vm1265_vm2, %v410_v27, 0.0  ;;  %v370_v53 = vsel %vm369_vm6, %v929_v43, %v930_v42  ;;  %v449_v12 = vrot.slane %v388_v58, 4  ;;  %v726_v58 = vld [vmem:[%s1493_s6] sm:$0xf] }
 0x123   : > { %845 = vmatpush.msk.msra.mxu0 %vm463_vm3, %v413_v29  ;;  %847 = vmatpush.msk.msra.mxu1 %vm463_vm3, %v414_v30  ;;  %v374_v1 = vsel %vm1294_vm8, %v370_v53, 0.0  ;;  %v346_v27 = vsel %vm1294_vm8, %v1236_v4, 0.0  ;;  %v347_v4 = vsel %vm1299_vm9, %v1241_v6, 0.0 }
 0x124   : > { %v431_v19 = vrot.slane %v374_v1, 4 }
 0x127   : > { %v368_v31 = vpop.permute.xlu0 %367  ;;  %v440_v38 = vpop.permute.xlu2 %439 }
 0x128   : > { %v923_v34 = vpop.permute.xlu1 %922  ;;  %v371_v13 = vsel %vm369_vm6, %v930_v42, %v368_v31 }
 0x129   : > { %v925_v44 = vunpack.i.h.bf16 %v923_v34  ;;  %v924_v45 = vunpack.i.l.bf16 %v923_v34  ;;  %v375_v20 = vsel %vm1299_vm9, %v371_v13, 0.0 }
 0x12a   : > { %v432_v29 = vrot.slane %v375_v20, 4 }
 0x12b   : > { %v396_v52 = vsel %vm395_vm7, %v924_v45, %v925_v44  ;;  %v397_v57 = vsel %vm395_vm7, %v925_v44, %v394_v18 }
 0x12c   : > { %v400_v0 = vsel %vm1294_vm8, %v396_v52, 0.0  ;;  %v401_v5 = vsel %vm1299_vm9, %v397_v57, 0.0  ;;  %v718_v57 = vld [vmem:[%s1492_s5] sm:$0xf] }
 0x12f   : > { %v1289_v39 = vpop.permute.xlu0 %937  ;;  %v948_v56 = vpop.permute.xlu2 %947 }
 0x130   : > { %v933_v40 = vpop.permute.xlu1 %932  ;;  %v940_v50 = vunpack.i.h.bf16 %v1289_v39  ;;  %v939_v51 = vunpack.i.l.bf16 %v1289_v39  ;;  %v950_v2 = vunpack.i.h.bf16 %v948_v56  ;;  %v949_v3 = vunpack.i.l.bf16 %v948_v56 }
 0x131   : > { %v935_v54 = vunpack.i.h.bf16 %v933_v40  ;;  %v934_v55 = vunpack.i.l.bf16 %v933_v40 }
 0x132   : > { %v357_v7 = vsel %vm356_vm11, %v939_v51, %v940_v50  ;;  %v425_v22 = vsel %vm424_vm13, %v949_v3, %v950_v2 }
 0x133   : > { %v442_v10 = vsel %vm441_vm10, %v934_v55, %v935_v54  ;;  %v443_v11 = vsel %vm441_vm10, %v935_v54, %v440_v38  ;;  %v361_v16 = vsel %vm1269_vm4, %v357_v7, 0.0  ;;  %v464_v31 = vsel %vm463_vm3, %v346_v27, %v425_v22 }
 0x134   : > { %v468_v17 = vsel %vm463_vm3, %v442_v10, %v448_v60  ;;  %v469_v18 = vsel %vm463_vm3, %v443_v11, %v449_v12  ;;  %v466_v24 = vsel %vm463_vm3, %v361_v16, %v431_v19 }
 0x137   : > { %v943_v59 = vpop.permute.xlu0 %942  ;;  %v534_v38 = vpop.permute.xlu2 %533 }
 0x138   : > { %v457_v61 = vpop.permute.xlu1 %456  ;;  %v945_v62 = vunpack.i.h.bf16 %v943_v59  ;;  %v944_v63 = vunpack.i.l.bf16 %v943_v59 }
 0x13a   : > { %v459_v8 = vsel %vm458_vm12, %v944_v63, %v945_v62  ;;  %v460_v9 = vsel %vm458_vm12, %v945_v62, %v457_v61 }
 0x13b   : > { %v470_v14 = vsel %vm463_vm3, %v400_v0, %v459_v8  ;;  %v471_v15 = vsel %vm463_vm3, %v401_v5, %v460_v9 }
 0x13c   : > { %494 = vmatpush.msra.mxu0 %v470_v14  ;;  %514 = vmatpush.msra.mxu1 %v471_v15 }
 0x13e   : > { %495 = vmatpush.msra.mxu0 %v468_v17  ;;  %515 = vmatpush.msra.mxu1 %v469_v18 }
 0x13f   : > { %v423_v23 = vpop.permute.xlu0 %422 }
 0x140   : > { %v355_v26 = vpop.permute.xlu1 %354  ;;  %496 = vmatpush.msra.mxu0 %v466_v24  ;;  %v426_v32 = vsel %vm424_vm13, %v950_v2, %v423_v23 }
 0x141   : > { %v358_v30 = vsel %vm356_vm11, %v940_v50, %v355_v26  ;;  %v465_v35 = vsel %vm463_vm3, %v347_v4, %v426_v32 }
 0x142   : > { %497 = vmatpush.msra.mxu0 %v464_v31  ;;  %v362_v33 = vsel %vm1265_vm2, %v358_v30, 0.0 }
 0x143   : > { %v467_v34 = vsel %vm463_vm3, %v362_v33, %v432_v29  ;;  %846 = vmatmul.msk.f32.vlgmr.msra.gmra.mxu0 %vm472_vm14, %v329_v28 }
 0x144   : > { %516 = vmatpush.msra.mxu1 %v467_v34 }
 0x146   : > { %517 = vmatpush.msra.mxu1 %v465_v35 }
 0x147   : > { %848 = vmatmul.msk.f32.vlgmr.msra.gmra.mxu1 %vm472_vm14, %v329_v28 }
 0x148   : > { %v526_v36 = vpop.permute.xlu1 %525 }
 0x1c0   : > { %v499_v37 = vpop.f32.mrf.mxu0 }
 0x1c1   : > { %v528_v39 = vmul.f32 %v526_v36, %v499_v37 }
 0x1c3   : > { %v536_v40 = vadd.f32 %v534_v38, %v528_v39 }
 0x1c4   : > { %v519_v41 = vpop.f32.mrf.mxu1 }
 0x1c5   : > { %v529_v42 = vmul.f32 %v526_v36, %v519_v41  ;;  %v538_v43 = vmax.f32 %v536_v40, 0.0 }
 0x1c7   : > { %v537_v44 = vadd.f32 %v534_v38, %v529_v42  ;;  %542 = vrot.lane.b32.xlu0 %v538_v43, %s1087_s21 }
 0x1c9   : > { %v539_v45 = vmax.f32 %v537_v44, 0.0 }
 0x1cb   : > { %544 = vrot.lane.b32.xlu1 %v539_v45, %s1087_s21 }
 0x239   : > { %v543_v6 = vpop.permute.xlu0 %542 }
 0x23a   : > { %v1364_v52 = vsel %vm339_vm0, 0.0, %v543_v6 }
 0x23b   : > { %v616_v56 = vrot.slane %v1364_v52, 4 }
 0x23d   : > { %v545_v47 = vpop.permute.xlu1 %544 }
 0x23e   : > { %v1355_v49 = vsel %vm339_vm0, %v543_v6, %v545_v47  ;;  %v551_v50 = vsel %vm339_vm0, %v545_v47, 0.0 }
 0x23f   : > { %608 = vrot.lane.b32.xlu0 %v551_v50, %s1088_s23  ;;  %606 = vrot.lane.b32.xlu2 %v1355_v49, %s1088_s23  ;;  %v953_v51 = vpack.i.bf16 %v551_v50, %v1355_v49  ;;  %v617_v53 = vrot.slane %v1355_v49, 4  ;;  %v618_v54 = vrot.slane %v551_v50, 4 }
 0x241   : > { %954 = vrot.lane.b32.xlu1 %v953_v51, %s1089_s12  ;;  %v978_v55 = vpack.i.bf16 %v618_v54, %v617_v53 }
 0x247   : > { %604 = vrot.lane.b32.xlu0 %v1364_v52, %s1088_s23  ;;  %959 = vrot.lane.b32.xlu2 %v953_v51, %s1091_s8 }
 0x249   : > { %592 = vrot.lane.b32.xlu1 %v1364_v52, %s1091_s8 }
 0x24f   : > { %580 = vrot.lane.b32.xlu0 %v1364_v52, %s1089_s12  ;;  %964 = vrot.lane.b32.xlu2 %v953_v51, %s1090_s29 }
 0x251   : > { %974 = vrot.lane.b32.xlu1 %v953_v51, %s1092_s9 }
 0x257   : > { %635 = vrot.lane.b32.xlu0 %v1364_v52, %s1093_s16  ;;  %969 = vrot.lane.b32.xlu2 %v953_v51, %s1093_s16  ;;  %s859_s16 = sshll.u32 %s1158_s28, 3  ;;  %s750_s28 = scalar_lea.sflag [#allocation4], %s1223_s15 }
 0x258   : > { %s761_s20 = scalar_lea.hbm %s1494_s7, %s859_s16 }
 0x259   : > { %979 = vrot.lane.b32.xlu1 %v978_v55, %s1094_s17  ;;  %s765_s19 = sshll.u32 %s761_s20, 4  ;;  %s766_s19 = int_to_ptr.hbm [resolvable:$true] %s765_s19 }
 0x25a   : > { %s1033_s21 = sshra.s32 %s766_s19, 4  ;;  %s1034_s21 = int_to_ptr.hbm [resolvable:$true] %s1033_s21 }
 0x25b   : > { %s1035_s23 = scalar_lea.hbm %s1034_s21, 8  ;;  %p1040_p0 = scmp.lt.s32.totalorder %s1034_s21, %s1494_s7 }
 0x25c   : > { %p1036_p6 = scmp.ne.s32.totalorder %s1034_s21, %s1035_s23  ;;  %p1041_p1 = scmp.lt.s32.totalorder %s1039_s10, %s1035_s23 }
 0x25e   : > { %p1037_p9 = pnand %p1036_p6, %p1187_p11  ;;  %p1042_p3 = por %p1041_p1, %p1040_p0 }
 0x25f   : > { %651 = vrot.lane.b32.xlu0 %v616_v56, %s1094_s17  ;;  %568 = vrot.lane.b32.xlu2 %v1364_v52, %s1090_s29 }
 0x260   : > { %p1038_p13 = pneg %p1037_p9 }
 0x261   : > { %556 = vrot.lane.b32.xlu1 %v1364_v52, %s1092_s9 }
 0x262   : > { %p1043_p4 = pnand %p1042_p3, %p1038_p13 }
 0x267   : > { %619 = vrot.lane.b32.xlu0 %v616_v56, %s1095_s11  ;;  %984 = vrot.lane.b32.xlu2 %v978_v55, %s1095_s11 }
 0x269   : > { %721 = vperm.xlu1 %951, %v718_v57  }
 0x26f   : > { %729 = vperm.xlu2 %952, %v726_v58  }
 0x299   : > { %v607_v59 = vpop.permute.xlu2 %606 }
 0x2a1   : > { %v960_v60 = vpop.permute.xlu2 %959 }
 0x2a2   : > { %v962_v14 = vunpack.i.h.bf16 %v960_v60  ;;  %v961_v15 = vunpack.i.l.bf16 %v960_v60 }
 0x2a4   : > { %v599_v19 = vsel %vm395_vm7, %v961_v15, %v962_v14 }
 0x2a5   : > { %v603_v29 = vsel %vm1299_vm9, %v599_v19, 0.0 }
 0x2a9   : > { %v965_v61 = vpop.permute.xlu2 %964 }
 0x2aa   : > { %v967_v16 = vunpack.i.h.bf16 %v965_v61  ;;  %v966_v17 = vunpack.i.l.bf16 %v965_v61 }
 0x2ac   : > { %v575_v26 = vsel %vm369_vm6, %v966_v17, %v967_v16  ;;  %v735_v16 = vld.sshfl [vmem:[#allocation1] sm:$0xff pattern:$0x75316420] }
 0x2ad   : > { %v579_v36 = vsel %vm1299_vm9, %v575_v26, 0.0 }
 0x2ae   : > { %v632_v51 = vrot.slane %v579_v36, 4 }
 0x2b1   : > { %v609_v62 = vpop.permute.xlu0 %608  ;;  %v970_v2 = vpop.permute.xlu2 %969 }
 0x2b2   : > { %v611_v63 = vsel %vm408_vm1, %v607_v59, %v609_v62  ;;  %v972_v30 = vunpack.i.h.bf16 %v970_v2  ;;  %v971_v31 = vunpack.i.l.bf16 %v970_v2  ;;  %v553_v62 = vsel %vm1299_vm9, %v1355_v49, 0.0 }
 0x2b3   : > { %v955_v0 = vpop.permute.xlu1 %954  ;;  %v615_v1 = vsel %vm1265_vm2, %v611_v63, 0.0  ;;  %v330_v63 = vld [vmem:[%s1489_s2] sm:$0xf] }
 0x2b4   : > { %851 = vmatpush.msk.msra.mxu3 %vm463_vm3, %v615_v1  ;;  %v957_v11 = vunpack.i.h.bf16 %v955_v0  ;;  %v956_v12 = vunpack.i.l.bf16 %v955_v0  ;;  %v642_v44 = vsel %vm441_vm10, %v971_v31, %v972_v30 }
 0x2b6   : > { %v587_v18 = vsel %vm382_vm5, %v956_v12, %v957_v11  ;;  %v736_v11 = vld.sshfl [vmem:[#allocation1 + $0x8] sm:$0xff pattern:$0x75316420] }
 0x2b7   : > { %v591_v24 = vsel %vm1265_vm2, %v587_v18, 0.0 }
 0x2b8   : > { %v648_v4 = vrot.slane %v591_v24, 4 }
 0x2b9   : > { %v605_v3 = vpop.permute.xlu0 %604  ;;  %v569_v9 = vpop.permute.xlu2 %568 }
 0x2ba   : > { %v610_v5 = vsel %vm408_vm1, %v605_v3, %v607_v59  ;;  %v574_v37 = vsel %vm369_vm6, %v569_v9, %v966_v17  ;;  %v666_v50 = vsel %vm463_vm3, %v642_v44, %v648_v4 }
 0x2bb   : > { %v593_v7 = vpop.permute.xlu1 %592  ;;  %v614_v8 = vsel %vm1269_vm4, %v610_v5, 0.0  ;;  %v578_v6 = vsel %vm1294_vm8, %v574_v37, 0.0  ;;  %v552_v5 = vsel %vm1294_vm8, %v1364_v52, 0.0 }
 0x2bc   : > { %849 = vmatpush.msk.msra.mxu2 %vm463_vm3, %v614_v8  ;;  %v598_v41 = vsel %vm395_vm7, %v593_v7, %v961_v15  ;;  %v631_v60 = vrot.slane %v578_v6, 4 }
 0x2bd   : > { %v602_v55 = vsel %vm1294_vm8, %v598_v41, 0.0 }
 0x2c1   : > { %v581_v10 = vpop.permute.xlu0 %580  ;;  %v985_v27 = vpop.permute.xlu2 %984 }
 0x2c2   : > { %v586_v34 = vsel %vm382_vm5, %v581_v10, %v956_v12  ;;  %v987_v38 = vunpack.i.h.bf16 %v985_v27  ;;  %v986_v39 = vunpack.i.l.bf16 %v985_v27 }
 0x2c3   : > { %v975_v13 = vpop.permute.xlu1 %974  ;;  %v590_v43 = vsel %vm1269_vm4, %v586_v34, 0.0 }
 0x2c4   : > { %v977_v20 = vunpack.i.h.bf16 %v975_v13  ;;  %v976_v22 = vunpack.i.l.bf16 %v975_v13  ;;  %v626_v56 = vsel %vm424_vm13, %v986_v39, %v987_v38  ;;  %v647_v57 = vrot.slane %v590_v43, 4 }
 0x2c5   : > { %v662_v1 = vsel %vm463_vm3, %v553_v62, %v626_v56 }
 0x2c6   : > { %v563_v35 = vsel %vm356_vm11, %v976_v22, %v977_v20 }
 0x2c7   : > { %v567_v45 = vsel %vm1265_vm2, %v563_v35, 0.0 }
 0x2c8   : > { %v664_v59 = vsel %vm463_vm3, %v567_v45, %v632_v51 }
 0x2c9   : > { %v636_v23 = vpop.permute.xlu0 %635  ;;  %v730_v10 = vpop.permute.xlu2 %729 }
 0x2ca   : > { %v641_v53 = vsel %vm441_vm10, %v636_v23, %v971_v31 }
 0x2cb   : > { %v980_v28 = vpop.permute.xlu1 %979  ;;  %v665_v0 = vsel %vm463_vm3, %v641_v53, %v647_v57 }
 0x2cc   : > { %v982_v32 = vunpack.i.h.bf16 %v980_v28  ;;  %v981_v33 = vunpack.i.l.bf16 %v980_v28 }
 0x2ce   : > { %v658_v40 = vsel %vm458_vm12, %v981_v33, %v982_v32 }
 0x2cf   : > { %v668_v42 = vsel %vm463_vm3, %v603_v29, %v658_v40 }
 0x2d0   : > { %710 = vmatpush.msra.mxu3 %v668_v42 }
 0x2d1   : > { %v652_v47 = vpop.permute.xlu0 %651 }
 0x2d2   : > { %v657_v54 = vsel %vm458_vm12, %v652_v47, %v981_v33  ;;  %711 = vmatpush.msra.mxu3 %v666_v50 }
 0x2d3   : > { %v557_v21 = vpop.permute.xlu1 %556  ;;  %v667_v58 = vsel %vm463_vm3, %v602_v55, %v657_v54 }
 0x2d4   : > { %v562_v61 = vsel %vm356_vm11, %v557_v21, %v976_v22  ;;  %690 = vmatpush.msra.mxu2 %v667_v58  ;;  %712 = vmatpush.msra.mxu3 %v664_v59 }
 0x2d5   : > { %v566_v2 = vsel %vm1269_vm4, %v562_v61, 0.0 }
 0x2d6   : > { %691 = vmatpush.msra.mxu2 %v665_v0  ;;  %713 = vmatpush.msra.mxu3 %v662_v1  ;;  %v663_v3 = vsel %vm463_vm3, %v566_v2, %v631_v60 }
 0x2d7   : > { %852 = vmatmul.msk.f32.vlgmr.msra.gmra.mxu3 %vm472_vm14, %v330_v63 }
 0x2d8   : > { %692 = vmatpush.msra.mxu2 %v663_v3 }
 0x2d9   : > { %v620_v48 = vpop.permute.xlu0 %619 }
 0x2da   : > { %v625_v49 = vsel %vm424_vm13, %v620_v48, %v986_v39 }
 0x2db   : > { %v661_v7 = vsel %vm463_vm3, %v552_v5, %v625_v49  ;;  %v722_v25 = vpop.permute.xlu1 %721 }
 0x2dc   : > { %693 = vmatpush.msra.mxu2 %v661_v7 }
 0x2dd   : > { %850 = vmatmul.msk.f32.vlgmr.msra.gmra.mxu2 %vm472_vm14, %v330_v63 }
 0x35a   : > { %v715_v8 = vpop.f32.mrf.mxu3 }
 0x35b   : > { %v725_v9 = vmul.f32 %v722_v25, %v715_v8 }
 0x35d   : > { %v733_v12 = vadd.f32 %v730_v10, %v725_v9 }
 0x35f   : > { %v740_v13 = vadd.f32 %v736_v11, %v733_v12 }
 0x360   : > { %v695_v14 = vpop.f32.mrf.mxu2 }
 0x361   : > { %v724_v15 = vmul.f32 %v722_v25, %v695_v14  ;;  %v742_v46 = vmax.f32 %v740_v13, 0.0 }
 0x363   : > { %v732_v52 = vadd.f32 %v730_v10, %v724_v15  ;;  %v745_v18 = vrot.slane %v742_v46, 4 }
 0x365   : > { %v739_v17 = vadd.f32 %v735_v16, %v732_v52 }
 0x367   : > { %v741_v19 = vmax.f32 %v739_v17, 0.0 }
 0x369   : > { %v746_v20 = vsel %vm463_vm3, %v741_v19, %v745_v18 }
 0x36a   : > { %748 = vst [vmem:[%s296_s22] sm:$0xff] %v746_v20 }
 0x36b   : > { %1046 = shalt.err (!%p1043_p4)
}
 0x36c   : > { %862 = dma.vmem_to_hbm [thread:$0]  (%p1187_p11), %s764_s18, 128, %s766_s19, %s750_s28  }
 0x36d PF: > { %s777_s15 = sand.u32 1, %s1073_s24   ;;  %p1509_p7 = scmp.ge.s32.totalorder %s1085_s27, 2 }
 0x36e   : > { %s778_s16 = scalar_lea.sflag [#allocation4], %s777_s15 }
 0x36f   : > { %p869_p5 = pnand %p1509_p7, %p1191_p12 }
 0x371   : > { %p870_p8 = pneg %p869_p5 }
 0x373   : > { %1068 = dma.done.wait (%p870_p8), %s778_s16, 128  }
 0x374   : > { %1070 = vsyncadd (%p870_p8), %s778_s16, 4294967168  ;;  %s1510_s17 = sld [smem:[#allocation8_spill]]  ;;  %p20_p10 = scmp.ge.s32.totalorder %s1162_s30, 4  }
 0x375   : > { %s1511_s24 = smov %s1077_s25  ;;  %s1512_s25 = smov %s1081_s26 }
 0x376   : > { %s1514_s27 = smov %s1162_s30  ;;  %22 = sbr.rel (!%p20_p10) target bundleno = 5 (0x5), region = 93 }
 0x37a   : > { %s1513_s26 = smov %s1510_s17 }
 0x37b   :  { %784 = vsyncpa [#allocation3], 1 }
 0x37c   :  { %786 = vsyncpa [#allocation3 + $0x1], 1 }
 0x37d   :  { %787 = vsyncpa [#allocation4], 1 }
 0x37e   :  { %789 = vsyncpa [#allocation4 + $0x1], 1 }

</bundles_post_ra>
